<compile_context>
chip_gen: v5e
topology: v5e:2x2
jax: 0.10.0
libtpu: 0.0.40
codegen_flags: <defaults>
</compile_context>

<pallas_src>
import jax
import jax.numpy as jnp
from jax.experimental import pallas as pl
from jax.experimental.pallas import tpu as pltpu

MSE_LAMBDA = 0.01
VOL_LAMBDA = 1.0

_LANE = 128            # TPU lane width (last dim of every tile)
_SUBLANE_ALIGN = 32    # covers f32 (8), bf16 (16) and int8/bool (32) packing
_MAX_TM = 2048         # 5 inputs x 2 bufs x 2048 x 128 x 4B ~ 10.5 MiB
_VMEM_LIMIT = 32 * 1024 * 1024


def _round_up(x, m):
    return (x + m - 1) // m * m


def _core_count():
    """2 only on devices with two TensorCores worth a 'parallel' core axis
    (v7x; megacore v4/v5p).  v5e/v6e are single-TC: a core axis there only
    inflates bookkeeping, so use 1."""
    try:
        kind = jax.devices()[0].device_kind.lower()
    except Exception:
        return 1
    if "v7" in kind or "v5p" in kind or kind.endswith("v4"):
        return 2
    return 1


def _make_kernel(tm, G, NB, M, needs_mask):
    """Accumulate sum|d|*m, sum d^2*m, sum|dv|*m, sum dv^2*m for this row tile
    into the resident (1, 4, 8, 128) output block.  Per-tile reduction is pure
    vreg-wise VPU adds (reshape to (tm/8, 8, 128), sum over axis 0); no
    cross-lane reductions or scalar round-trips inside the hot loop."""

    def kernel(yh_ref, y_ref, yvh_ref, yv_ref, m_ref, out_ref):
        i = pl.program_id(1)

        @pl.when(i == 0)
        def _():
            out_ref[...] = jnp.zeros_like(out_ref)

        d = yh_ref[...].astype(jnp.float32) - y_ref[...].astype(jnp.float32)
        dv = yvh_ref[...].astype(jnp.float32) - yv_ref[...].astype(jnp.float32)
        mk = m_ref[...].astype(jnp.float32)

        if needs_mask:
            # Ragged last row tile (rows >= M are stale DMA bytes) and/or a
            # clamped duplicate tile on the short core: zero them out so they
            # contribute nothing (also kills any NaN/Inf garbage).
            c = pl.program_id(0)
            tile = c * G + i
            row0 = jnp.minimum(tile, NB - 1) * tm
            rows = jax.lax.broadcasted_iota(jnp.int32, (tm, _LANE), 0) + row0
            valid = (rows < M) & (tile < NB)
            d = jnp.where(valid, d, 0.0)
            dv = jnp.where(valid, dv, 0.0)
            mk = jnp.where(valid, mk, 0.0)

        dm = d * mk      # d * mask
        dvm = dv * mk    # dv * mask

        def fold(x):     # (tm, 128) -> (8, 128), pure vreg-wise adds
            return x.reshape(-1, 8, _LANE).sum(axis=0)

        # |d|*m (exact for any mask sign), d^2*m, |dv|*m, dv^2*m
        out_ref[0, 0] += fold(jnp.abs(d) * mk)
        out_ref[0, 1] += fold(d * dm)
        out_ref[0, 2] += fold(jnp.abs(dv) * mk)
        out_ref[0, 3] += fold(dv * dvm)

    return kernel


@jax.jit
def _regression_loss_pallas(y_hat, y, y_vol_hat, y_vol, mask):
    total_n = y_hat.size

    def prep(a):
        flat = a.reshape(-1)
        rem = flat.shape[0] % _LANE
        if rem:
            # Only when the element count is not lane-aligned; zero padding in
            # the last valid row contributes nothing to the masked sums.
            flat = jnp.pad(flat, (0, _LANE - rem))
        return flat.reshape(-1, _LANE)   # free reshape when rem == 0

    yh2, y2, yvh2, yv2 = prep(y_hat), prep(y), prep(y_vol_hat), prep(y_vol)
    mk2 = prep(mask)                     # native dtype (bool/int8/f32/bf16)

    M = yh2.shape[0]                                  # valid rows (static)
    tm = min(_MAX_TM, _round_up(M, _SUBLANE_ALIGN))   # row-tile size
    NB = pl.cdiv(M, tm)                               # real row tiles
    ncores = min(_core_count(), NB)                   # leading "parallel" axis
    G = pl.cdiv(NB, ncores)                           # tiles per core
    # All quantities are trace-time Python ints, so ragged handling is decided
    # statically: no scalar prefetch / SMEM scalar needed.
    needs_mask = (NB * tm != M) or (ncores * G != NB)

    if ncores * G == NB:
        def idx(c, i):
            return (c * G + i, 0)
    else:
        def idx(c, i):
            return (jnp.minimum(c * G + i, NB - 1), 0)

    in_spec = pl.BlockSpec((tm, _LANE), idx)
    out_spec = pl.BlockSpec((1, 4, 8, _LANE), lambda c, i: (c, 0, 0, 0))

    partial = pl.pallas_call(
        _make_kernel(tm, G, NB, M, needs_mask),
        out_shape=jax.ShapeDtypeStruct((ncores, 4, 8, _LANE), jnp.float32),
        grid_spec=pltpu.PrefetchScalarGridSpec(
            num_scalar_prefetch=0,
            grid=(ncores, G),
            in_specs=[in_spec] * 5,
            out_specs=out_spec,
        ),
        compiler_params=pltpu.CompilerParams(
            dimension_semantics=("parallel", "arbitrary"),
            vmem_limit_bytes=_VMEM_LIMIT,
        ),
    )(yh2, y2, yvh2, yv2, mk2)

    # Tiny final reduce (ncores*4*8*128 floats) + mean + combine, inside jit.
    sums = jnp.sum(partial, axis=(0, 2, 3))  # (4,)
    # Mean divisor is the total element count (PyTorch .mean() over ALL
    # elements) — intentionally NOT mask.sum().
    inv_n = 1.0 / float(total_n)
    sales = sums[0] * inv_n + MSE_LAMBDA * (sums[1] * inv_n)
    vol = sums[2] * inv_n + MSE_LAMBDA * (sums[3] * inv_n)
    total = sales + VOL_LAMBDA * vol
    return total, sales, vol


def regression_loss(y_hat, y, y_vol_hat, y_vol, mask):
    """Mirrors RegressionLoss.forward: returns (total_loss, stats_dict)."""
    # TODO(synk): PyTorch's .item() forces a host sync; we return device
    # scalars instead to keep the training step asynchronous.
    total, sales, vol = _regression_loss_pallas(y_hat, y, y_vol_hat, y_vol, mask)
    return total, {"sales_smooth_loss": sales, "volume_smooth_loss": vol}


def _reference(y_hat, y, y_vol_hat, y_vol, mask):
    mask = mask.astype(jnp.float32)

    def smooth(a, b, m):
        a = a.astype(jnp.float32)
        b = b.astype(jnp.float32)
        return (jnp.abs(a - b) * m).mean() + MSE_LAMBDA * (((a - b) ** 2) * m).mean()

    sales = smooth(y_hat, y, mask)
    vol = smooth(y_vol_hat, y_vol, mask)
    return sales + VOL_LAMBDA * vol, sales, vol


if __name__ == "__main__":
    key = jax.random.PRNGKey(0)
    k1, k2, k3, k4, k5 = jax.random.split(key, 5)

    # Small shapes consistent with the module's forward: (batch, seq, features)
    B, T, F = 2, 16, 128
    y_hat = jax.random.normal(k1, (B, T, F), dtype=jnp.float32)
    y = jax.random.normal(k2, (B, T, F), dtype=jnp.float32)
    y_vol_hat = jax.random.normal(k3, (B, T, F), dtype=jnp.float32)
    y_vol = jax.random.normal(k4, (B, T, F), dtype=jnp.float32)
    mask = (jax.random.uniform(k5, (B, T, F)) > 0.3).astype(jnp.float32)

    total, stats = regression_loss(y_hat, y, y_vol_hat, y_vol, mask)
    total = jax.block_until_ready(total)

    ref_total, ref_sales, ref_vol = _reference(y_hat, y, y_vol_hat, y_vol, mask)
    assert jnp.allclose(total, ref_total, rtol=1e-5, atol=1e-5)
    assert abs(float(stats["sales_smooth_loss"]) - float(ref_sales)) < 1e-5
    assert abs(float(stats["volume_smooth_loss"]) - float(ref_vol)) < 1e-5

    print("KERNEL_OK")
</pallas_src>

<mosaic_0001>
module attributes {stable_mosaic.version = 11 : i64} {
  func.func @kernel(%arg0: i32, %arg1: i32, %arg2: memref<32x128xf32, #tpu.memory_space<vmem>>, %arg3: memref<32x128xf32, #tpu.memory_space<vmem>>, %arg4: memref<32x128xf32, #tpu.memory_space<vmem>>, %arg5: memref<32x128xf32, #tpu.memory_space<vmem>>, %arg6: memref<32x128xf32, #tpu.memory_space<vmem>>, %arg7: memref<1x4x8x128xf32, #tpu.memory_space<vmem>>) attributes {dimension_semantics = [#tpu.dimension_semantics<parallel>, #tpu.dimension_semantics<arbitrary>], iteration_bounds = array<i64: 1, 1>, scalar_prefetch = 0 : i64, scratch_operands = 0 : i64, tpu.core_type = #tpu.core_type<tc>, window_params = [{transform_indices = @transform_0, window_bounds = array<i64: 32, 128>}, {transform_indices = @transform_1, window_bounds = array<i64: 32, 128>}, {transform_indices = @transform_2, window_bounds = array<i64: 32, 128>}, {transform_indices = @transform_3, window_bounds = array<i64: 32, 128>}, {transform_indices = @transform_4, window_bounds = array<i64: 32, 128>}, {transform_indices = @transform_5, window_bounds = array<i64: 1, 4, 8, 128>}]} {
    %c0_i32 = arith.constant 0 : i32
    %0 = arith.cmpi eq, %arg1, %c0_i32 : i32
    %1 = arith.extui %0 : i1 to i32
    %c0_i32_0 = arith.constant 0 : i32
    %2 = arith.cmpi ne, %1, %c0_i32_0 : i32
    scf.if %2 {
      %cst_42 = arith.constant 0.000000e+00 : f32
      %50 = vector.broadcast %cst_42 : f32 to vector<1x4x8x128xf32>
      %c0_43 = arith.constant 0 : index
      %c0_44 = arith.constant 0 : index
      %c0_45 = arith.constant 0 : index
      %c0_46 = arith.constant 0 : index
      %51 = vector.load %arg7[%c0_43, %c0_44, %c0_45, %c0_46] : memref<1x4x8x128xf32, #tpu.memory_space<vmem>>, vector<1x4x8x128xf32>
      tpu.vector_store %arg7[%c0_43, %c0_44, %c0_45, %c0_46], %50 {strides = array<i32>} : memref<1x4x8x128xf32, #tpu.memory_space<vmem>>, vector<1x4x8x128xf32>,
    } else {
    }
    %c0 = arith.constant 0 : index
    %c0_1 = arith.constant 0 : index
    %3 = vector.load %arg2[%c0, %c0_1] : memref<32x128xf32, #tpu.memory_space<vmem>>, vector<32x128xf32>
    %c0_2 = arith.constant 0 : index
    %c0_3 = arith.constant 0 : index
    %4 = vector.load %arg3[%c0_2, %c0_3] : memref<32x128xf32, #tpu.memory_space<vmem>>, vector<32x128xf32>
    %5 = arith.subf %3, %4 : vector<32x128xf32>
    %c0_4 = arith.constant 0 : index
    %c0_5 = arith.constant 0 : index
    %6 = vector.load %arg4[%c0_4, %c0_5] : memref<32x128xf32, #tpu.memory_space<vmem>>, vector<32x128xf32>
    %c0_6 = arith.constant 0 : index
    %c0_7 = arith.constant 0 : index
    %7 = vector.load %arg5[%c0_6, %c0_7] : memref<32x128xf32, #tpu.memory_space<vmem>>, vector<32x128xf32>
    %8 = arith.subf %6, %7 : vector<32x128xf32>
    %c0_8 = arith.constant 0 : index
    %c0_9 = arith.constant 0 : index
    %9 = vector.load %arg6[%c0_8, %c0_9] : memref<32x128xf32, #tpu.memory_space<vmem>>, vector<32x128xf32>
    %10 = arith.mulf %5, %9 : vector<32x128xf32>
    %11 = arith.mulf %8, %9 : vector<32x128xf32>
    %c0_10 = arith.constant 0 : index
    %c0_11 = arith.constant 0 : index
    %c0_12 = arith.constant 0 : index
    %c0_13 = arith.constant 0 : index
    %12 = vector.load %arg7[%c0_10, %c0_11, %c0_12, %c0_13] : memref<1x4x8x128xf32, #tpu.memory_space<vmem>>, vector<1x1x8x128xf32>
    %13 = vector.shape_cast %12 : vector<1x1x8x128xf32> to vector<8x128xf32>
    %14 = math.absf %5 : vector<32x128xf32>
    %15 = arith.mulf %14, %9 : vector<32x128xf32>
    %16 = vector.shape_cast %15 : vector<32x128xf32> to vector<4x8x128xf32>
    %cst = arith.constant dense<0.000000e+00> : vector<8x128xf32>
    %17 = vector.multi_reduction <add>, %16, %cst [0] : vector<4x8x128xf32> to vector<8x128xf32>
    %18 = arith.addf %13, %17 : vector<8x128xf32>
    %c0_14 = arith.constant 0 : index
    %c0_15 = arith.constant 0 : index
    %c0_16 = arith.constant 0 : index
    %c0_17 = arith.constant 0 : index
    %19 = vector.load %arg7[%c0_14, %c0_15, %c0_16, %c0_17] : memref<1x4x8x128xf32, #tpu.memory_space<vmem>>, vector<1x1x8x128xf32>
    %20 = vector.shape_cast %19 : vector<1x1x8x128xf32> to vector<8x128xf32>
    %21 = vector.shape_cast %18 : vector<8x128xf32> to vector<1x1x8x128xf32>
    tpu.vector_store %arg7[%c0_14, %c0_15, %c0_16, %c0_17], %21 {strides = array<i32>} : memref<1x4x8x128xf32, #tpu.memory_space<vmem>>, vector<1x1x8x128xf32>,
    %c0_18 = arith.constant 0 : index
    %c1 = arith.constant 1 : index
    %c0_19 = arith.constant 0 : index
    %c0_20 = arith.constant 0 : index
    %22 = vector.load %arg7[%c0_18, %c1, %c0_19, %c0_20] : memref<1x4x8x128xf32, #tpu.memory_space<vmem>>, vector<1x1x8x128xf32>
    %23 = vector.shape_cast %22 : vector<1x1x8x128xf32> to vector<8x128xf32>
    %24 = arith.mulf %5, %10 : vector<32x128xf32>
    %25 = vector.shape_cast %24 : vector<32x128xf32> to vector<4x8x128xf32>
    %cst_21 = arith.constant dense<0.000000e+00> : vector<8x128xf32>
    %26 = vector.multi_reduction <add>, %25, %cst_21 [0] : vector<4x8x128xf32> to vector<8x128xf32>
    %27 = arith.addf %23, %26 : vector<8x128xf32>
    %c0_22 = arith.constant 0 : index
    %c1_23 = arith.constant 1 : index
    %c0_24 = arith.constant 0 : index
    %c0_25 = arith.constant 0 : index
    %28 = vector.load %arg7[%c0_22, %c1_23, %c0_24, %c0_25] : memref<1x4x8x128xf32, #tpu.memory_space<vmem>>, vector<1x1x8x128xf32>
    %29 = vector.shape_cast %28 : vector<1x1x8x128xf32> to vector<8x128xf32>
    %30 = vector.shape_cast %27 : vector<8x128xf32> to vector<1x1x8x128xf32>
    tpu.vector_store %arg7[%c0_22, %c1_23, %c0_24, %c0_25], %30 {strides = array<i32>} : memref<1x4x8x128xf32, #tpu.memory_space<vmem>>, vector<1x1x8x128xf32>,
    %c0_26 = arith.constant 0 : index
    %c2 = arith.constant 2 : index
    %c0_27 = arith.constant 0 : index
    %c0_28 = arith.constant 0 : index
    %31 = vector.load %arg7[%c0_26, %c2, %c0_27, %c0_28] : memref<1x4x8x128xf32, #tpu.memory_space<vmem>>, vector<1x1x8x128xf32>
    %32 = vector.shape_cast %31 : vector<1x1x8x128xf32> to vector<8x128xf32>
    %33 = math.absf %8 : vector<32x128xf32>
    %34 = arith.mulf %33, %9 : vector<32x128xf32>
    %35 = vector.shape_cast %34 : vector<32x128xf32> to vector<4x8x128xf32>
    %cst_29 = arith.constant dense<0.000000e+00> : vector<8x128xf32>
    %36 = vector.multi_reduction <add>, %35, %cst_29 [0] : vector<4x8x128xf32> to vector<8x128xf32>
    %37 = arith.addf %32, %36 : vector<8x128xf32>
    %c0_30 = arith.constant 0 : index
    %c2_31 = arith.constant 2 : index
    %c0_32 = arith.constant 0 : index
    %c0_33 = arith.constant 0 : index
    %38 = vector.load %arg7[%c0_30, %c2_31, %c0_32, %c0_33] : memref<1x4x8x128xf32, #tpu.memory_space<vmem>>, vector<1x1x8x128xf32>
    %39 = vector.shape_cast %38 : vector<1x1x8x128xf32> to vector<8x128xf32>
    %40 = vector.shape_cast %37 : vector<8x128xf32> to vector<1x1x8x128xf32>
    tpu.vector_store %arg7[%c0_30, %c2_31, %c0_32, %c0_33], %40 {strides = array<i32>} : memref<1x4x8x128xf32, #tpu.memory_space<vmem>>, vector<1x1x8x128xf32>,
    %c0_34 = arith.constant 0 : index
    %c3 = arith.constant 3 : index
    %c0_35 = arith.constant 0 : index
    %c0_36 = arith.constant 0 : index
    %41 = vector.load %arg7[%c0_34, %c3, %c0_35, %c0_36] : memref<1x4x8x128xf32, #tpu.memory_space<vmem>>, vector<1x1x8x128xf32>
    %42 = vector.shape_cast %41 : vector<1x1x8x128xf32> to vector<8x128xf32>
    %43 = arith.mulf %8, %11 : vector<32x128xf32>
    %44 = vector.shape_cast %43 : vector<32x128xf32> to vector<4x8x128xf32>
    %cst_37 = arith.constant dense<0.000000e+00> : vector<8x128xf32>
    %45 = vector.multi_reduction <add>, %44, %cst_37 [0] : vector<4x8x128xf32> to vector<8x128xf32>
    %46 = arith.addf %42, %45 : vector<8x128xf32>
    %c0_38 = arith.constant 0 : index
    %c3_39 = arith.constant 3 : index
    %c0_40 = arith.constant 0 : index
    %c0_41 = arith.constant 0 : index
    %47 = vector.load %arg7[%c0_38, %c3_39, %c0_40, %c0_41] : memref<1x4x8x128xf32, #tpu.memory_space<vmem>>, vector<1x1x8x128xf32>
    %48 = vector.shape_cast %47 : vector<1x1x8x128xf32> to vector<8x128xf32>
    %49 = vector.shape_cast %46 : vector<8x128xf32> to vector<1x1x8x128xf32>
    tpu.vector_store %arg7[%c0_38, %c3_39, %c0_40, %c0_41], %49 {strides = array<i32>} : memref<1x4x8x128xf32, #tpu.memory_space<vmem>>, vector<1x1x8x128xf32>,
    return
  }
  func.func @transform_0(%arg0: i32, %arg1: i32) -> (i32, i32) {
    %c1_i32 = arith.constant 1 : i32
    %0 = arith.muli %arg0, %c1_i32 : i32
    %1 = arith.addi %0, %arg1 : i32
    %c0_i32 = arith.constant 0 : i32
    %c0_i32_0 = arith.constant 0 : i32
    return %1, %c0_i32 : i32, i32
  }
  func.func @transform_1(%arg0: i32, %arg1: i32) -> (i32, i32) {
    %c1_i32 = arith.constant 1 : i32
    %0 = arith.muli %arg0, %c1_i32 : i32
    %1 = arith.addi %0, %arg1 : i32
    %c0_i32 = arith.constant 0 : i32
    %c0_i32_0 = arith.constant 0 : i32
    return %1, %c0_i32 : i32, i32
  }
  func.func @transform_2(%arg0: i32, %arg1: i32) -> (i32, i32) {
    %c1_i32 = arith.constant 1 : i32
    %0 = arith.muli %arg0, %c1_i32 : i32
    %1 = arith.addi %0, %arg1 : i32
    %c0_i32 = arith.constant 0 : i32
    %c0_i32_0 = arith.constant 0 : i32
    return %1, %c0_i32 : i32, i32
  }
  func.func @transform_3(%arg0: i32, %arg1: i32) -> (i32, i32) {
    %c1_i32 = arith.constant 1 : i32
    %0 = arith.muli %arg0, %c1_i32 : i32
    %1 = arith.addi %0, %arg1 : i32
    %c0_i32 = arith.constant 0 : i32
    %c0_i32_0 = arith.constant 0 : i32
    return %1, %c0_i32 : i32, i32
  }
  func.func @transform_4(%arg0: i32, %arg1: i32) -> (i32, i32) {
    %c1_i32 = arith.constant 1 : i32
    %0 = arith.muli %arg0, %c1_i32 : i32
    %1 = arith.addi %0, %arg1 : i32
    %c0_i32 = arith.constant 0 : i32
    %c0_i32_0 = arith.constant 0 : i32
    return %1, %c0_i32 : i32, i32
  }
  func.func @transform_5(%arg0: i32, %arg1: i32) -> (i32, i32, i32, i32) {
    %c0_i32 = arith.constant 0 : i32
    %c0_i32_0 = arith.constant 0 : i32
    %c0_i32_1 = arith.constant 0 : i32
    %c0_i32_2 = arith.constant 0 : i32
    return %arg0, %c0_i32, %c0_i32_0, %c0_i32_1 : i32, i32, i32, i32
  }
}

</mosaic_0001>

<bundles_post_ra>
// kernel: _regression_loss_pallas.1
= control target key start
LH: loop header
LB: loop body
LE: loop exit
PB: predicated region body
PF: predicated region fallthrough
CT: control target
= control target key end

     0   :  { %10 = vsyncpa [#allocation3], 0  ;;  %s434_s0 = inlined_call_operand.hbm [shape: f32[32,128], index: 0, kind: input, shape index: {}]   ;;  %s435_s1 = inlined_call_operand.hbm [shape: f32[32,128], index: 1, kind: input, shape index: {}]   ;;  %s436_s2 = inlined_call_operand.hbm [shape: f32[32,128], index: 2, kind: input, shape index: {}]   ;;  %s437_s3 = inlined_call_operand.hbm [shape: f32[32,128], index: 3, kind: input, shape index: {}]   ;;  %s438_s4 = inlined_call_operand.hbm [shape: f32[32,128], index: 4, kind: input, shape index: {}]   ;;  %s439_s5 = inlined_call_operand.vmem [shape: f32[1,4,8,128], index: 5, kind: output, shape index: {}]  }
   0x1   :  { %11 = vsyncpa [#allocation5], 0 }
   0x2   :  { %12 = vsyncpa [#allocation8], 0  ;;  %s38_s20 = sshll.u32 %s435_s1, 4  ;;  %s370_s21 = smov [#allocation4]   ;;  %s39_s20 = int_to_ptr.hbm [resolvable:$true] %s38_s20 }
   0x3   :  { %s40_s22 = sshll.u32 %s370_s21, 4  ;;  %s72_s25 = sshll.u32 %s437_s3, 4  ;;  %s41_s22 = int_to_ptr.vmem [resolvable:$true] %s40_s22  ;;  %s73_s25 = int_to_ptr.hbm [resolvable:$true] %s72_s25 }
   0x4   :  { %s371_s26 = smov 128   ;;  %s372_s27 = smov 8  }
   0x5   :  { %46 = dma.hbm_to_vmem [thread:$0]  %s39_s20, 512, %s41_s22, [#allocation5], %s371_s26, %s371_s26, %s372_s27  }
   0x6   :  { %s373_s28 = smov [#allocation7]   ;;  %s21_s7 = sshll.u32 %s434_s0, 4  ;;  %s22_s7 = int_to_ptr.hbm [resolvable:$true] %s21_s7 }
   0x7   :  { %s74_s29 = sshll.u32 %s373_s28, 4  ;;  %s55_s9 = sshll.u32 %s436_s2, 4  ;;  %s75_s29 = int_to_ptr.vmem [resolvable:$true] %s74_s29  ;;  %s56_s9 = int_to_ptr.hbm [resolvable:$true] %s55_s9 }
   0x8   :  { %80 = dma.hbm_to_vmem [thread:$0]  %s73_s25, 512, %s75_s29, [#allocation8], %s371_s26, %s371_s26, %s372_s27  }
   0x9   :  { %s374_s10 = smov [#allocation2]   ;;  %s375_s3 = smov [#allocation6]  }
   0xa   :  { %s23_s11 = sshll.u32 %s374_s10, 4  ;;  %s57_s12 = sshll.u32 %s375_s3, 4  ;;  %s24_s11 = int_to_ptr.vmem [resolvable:$true] %s23_s11  ;;  %s58_s12 = int_to_ptr.vmem [resolvable:$true] %s57_s12 }
   0xb   :  { %29 = dma.hbm_to_vmem [thread:$0]  %s22_s7, 512, %s24_s11, [#allocation3], %s371_s26, %s371_s26, %s372_s27  }
   0xc   :  { %s89_s15 = sshll.u32 %s438_s4, 4  ;;  %s376_s0 = smov [#allocation9]   ;;  %s90_s15 = int_to_ptr.hbm [resolvable:$true] %s89_s15 }
   0xd   :  { %63 = dma.hbm_to_vmem [thread:$0]  %s56_s9, 512, %s58_s12, [#allocation5], %s371_s26, %s371_s26, %s372_s27  }
   0xe   :  { %s91_s16 = sshll.u32 %s376_s0, 4  ;;  %s92_s16 = int_to_ptr.vmem [resolvable:$true] %s91_s16 }
   0xf   :  { %97 = dma.hbm_to_vmem [thread:$0]  %s90_s15, 512, %s92_s16, [#allocation8], %s371_s26, %s371_s26, %s372_s27  }
  0x10   :  { %364 = dma.done.wait [#allocation3], 512  }
  0x11   :  { %365 = vsyncadd [#allocation3], 4294966784 }
  0x12   :  { %366 = dma.done.wait [#allocation5], 1024  }
  0x13   :  { %367 = vsyncadd [#allocation5], 4294966272 }
  0x14   :  { %368 = dma.done.wait [#allocation8], 1024  }
  0x15   :  { %369 = vsyncadd [#allocation8], 4294966272  ;;  %v136_v0 = vld [vmem:[#allocation2] sm:$0xff]  ;;  %v137_v1 = vld [vmem:[#allocation2 + $0x8] sm:$0xff] }
  0x16   :  { %v138_v2 = vld [vmem:[#allocation2 + $0x10] sm:$0xff]  ;;  %v139_v3 = vld [vmem:[#allocation2 + $0x18] sm:$0xff]  ;;  %v140_v4 = vld [vmem:[#allocation4] sm:$0xff] }
  0x17   :  { %v141_v5 = vld [vmem:[#allocation4 + $0x8] sm:$0xff]  ;;  %v142_v6 = vld [vmem:[#allocation4 + $0x10] sm:$0xff]  ;;  %v143_v7 = vld [vmem:[#allocation4 + $0x18] sm:$0xff]  ;;  %v144_v8 = vsub.f32 %v136_v0, %v140_v4 }
  0x18   :  { %v145_v9 = vsub.f32 %v137_v1, %v141_v5  ;;  %v160_v10 = vld [vmem:[#allocation9] sm:$0xff]  ;;  %v146_v11 = vsub.f32 %v138_v2, %v142_v6  ;;  %v147_v12 = vsub.f32 %v139_v3, %v143_v7  ;;  %v161_v13 = vld [vmem:[#allocation9 + $0x8] sm:$0xff]  ;;  %v162_v14 = vld [vmem:[#allocation9 + $0x10] sm:$0xff] }
  0x19   :  { %v163_v15 = vld [vmem:[#allocation9 + $0x18] sm:$0xff]  ;;  %v173_v16 = vand.u32 2147483647, %v144_v8  ;;  %v164_v18 = vmul.f32 %v160_v10, %v144_v8  ;;  %v148_v20 = vld [vmem:[#allocation6] sm:$0xff]  ;;  %v149_v21 = vld [vmem:[#allocation6 + $0x8] sm:$0xff] }
  0x1a   :  { %v174_v17 = vand.u32 2147483647, %v145_v9  ;;  %v165_v19 = vmul.f32 %v161_v13, %v145_v9  ;;  %v175_v22 = vand.u32 2147483647, %v146_v11  ;;  %v176_v23 = vand.u32 2147483647, %v147_v12 }
  0x1b   :  { %v166_v24 = vmul.f32 %v162_v14, %v146_v11  ;;  %v167_v25 = vmul.f32 %v163_v15, %v147_v12  ;;  %v150_v26 = vld [vmem:[#allocation6 + $0x10] sm:$0xff]  ;;  %v151_v27 = vld [vmem:[#allocation6 + $0x18] sm:$0xff]  ;;  %v177_v28 = vmul.f32 %v173_v16, %v160_v10  ;;  %v188_v30 = vmul.f32 %v164_v18, %v144_v8  ;;  %v152_v32 = vld [vmem:[#allocation7] sm:$0xff] }
  0x1c   :  { %v178_v29 = vmul.f32 %v174_v17, %v161_v13  ;;  %v189_v31 = vmul.f32 %v165_v19, %v145_v9  ;;  %v153_v33 = vld [vmem:[#allocation7 + $0x8] sm:$0xff]  ;;  %v154_v34 = vld [vmem:[#allocation7 + $0x10] sm:$0xff]  ;;  %v179_v35 = vmul.f32 %v175_v22, %v162_v14  ;;  %v180_v36 = vmul.f32 %v176_v23, %v163_v15  ;;  %v155_v39 = vld [vmem:[#allocation7 + $0x18] sm:$0xff] }
  0x1d   :  { %v190_v37 = vmul.f32 %v166_v24, %v146_v11  ;;  %v191_v38 = vmul.f32 %v167_v25, %v147_v12  ;;  %v156_v42 = vsub.f32 %v148_v20, %v152_v32  ;;  %v157_v43 = vsub.f32 %v149_v21, %v153_v33 }
  0x1e   :  { %v181_v40 = vadd.f32 %v178_v29, %v177_v28  ;;  %v192_v41 = vadd.f32 %v189_v31, %v188_v30  ;;  %v158_v44 = vsub.f32 %v150_v26, %v154_v34  ;;  %v159_v45 = vsub.f32 %v151_v27, %v155_v39 }
  0x1f   :  { %v199_v48 = vand.u32 2147483647, %v156_v42  ;;  %v200_v49 = vand.u32 2147483647, %v157_v43  ;;  %v168_v52 = vmul.f32 %v160_v10, %v156_v42  ;;  %v169_v53 = vmul.f32 %v161_v13, %v157_v43 }
  0x20   :  { %v182_v46 = vadd.f32 %v181_v40, %v179_v35  ;;  %v193_v47 = vadd.f32 %v192_v41, %v190_v37  ;;  %v201_v50 = vand.u32 2147483647, %v158_v44  ;;  %v202_v51 = vand.u32 2147483647, %v159_v45 }
  0x21   :  { %v203_v56 = vmul.f32 %v199_v48, %v160_v10  ;;  %v204_v57 = vmul.f32 %v200_v49, %v161_v13  ;;  %v170_v60 = vmul.f32 %v162_v14, %v158_v44  ;;  %v171_v61 = vmul.f32 %v163_v15, %v159_v45 }
  0x22   :  { %v183_v54 = vadd.f32 %v182_v46, %v180_v36  ;;  %v194_v55 = vadd.f32 %v193_v47, %v191_v38  ;;  %v205_v58 = vmul.f32 %v201_v50, %v162_v14  ;;  %v206_v59 = vmul.f32 %v202_v51, %v163_v15 }
  0x23   :  { %v207_v62 = vadd.f32 %v204_v57, %v203_v56  ;;  %v214_v63 = vmul.f32 %v168_v52, %v156_v42  ;;  %v215_v0 = vmul.f32 %v169_v53, %v157_v43  ;;  %v216_v1 = vmul.f32 %v170_v60, %v158_v44 }
  0x24   :  { %185 = vst [vmem:[%s439_s5] sm:$0xff] %v183_v54  ;;  %v217_v3 = vmul.f32 %v171_v61, %v159_v45 }
  0x25   :  { %v208_v2 = vadd.f32 %v207_v62, %v205_v58  ;;  %231 = vst [vmem:[%s439_s5 + $0x8] sm:$0xff] %v194_v55  ;;  %v218_v4 = vadd.f32 %v215_v0, %v214_v63 }
  0x27   :  { %v209_v5 = vadd.f32 %v208_v2, %v206_v59  ;;  %v219_v6 = vadd.f32 %v218_v4, %v216_v1 }
  0x29   :  { %v220_v7 = vadd.f32 %v219_v6, %v217_v3  ;;  %233 = vst [vmem:[%s439_s5 + $0x10] sm:$0xff] %v209_v5 }
  0x2b   :  { %235 = vst [vmem:[%s439_s5 + $0x18] sm:$0xff] %v220_v7 }
  0x2c   :  { %227 = vsyncpa [#allocation3], 1 }
  0x2d   :  { %228 = vsyncpa [#allocation5], 1 }
  0x2e   :  { %229 = vsyncpa [#allocation8], 1 }

</bundles_post_ra>
